<compile_context>
chip_gen: v7x
topology: tpu7x:2x2x1
jax: 0.10.0
libtpu: 0.0.40
codegen_flags: <defaults>
</compile_context>

<pallas_src>
import functools

import jax
import jax.numpy as jnp
from jax.experimental import pallas as pl
from jax.experimental.pallas import tpu as pltpu

_LANE = 128


def _round_up(a, b):
    return -(-a // b) * b


def _sublane_pack(dtype):
    # rows per sublane-aligned tile: 8 for 4-byte, 16 for 2-byte, 32 for 1-byte
    return {4: 8, 2: 16, 1: 32}.get(jnp.dtype(dtype).itemsize, 8)


def _h_sigmoid_math(x, compute_dtype, out_dtype):
    y = jnp.clip(x.astype(compute_dtype) + 3.0, 0.0, 6.0) * (1.0 / 6.0)
    return y.astype(out_dtype)


def _h_sigmoid_kernel(x_ref, o_ref, *, compute_dtype):
    o_ref[...] = _h_sigmoid_math(x_ref[...], compute_dtype, o_ref.dtype)


def _chip_tuning():
    """Per-generation tuning: (block_bytes, vmem_limit_bytes, multi_tc, native_lowp)."""
    kind = ""
    try:
        kind = jax.devices()[0].device_kind.lower()
    except Exception:
        pass

    # Conservative defaults (correct on every chip, tuned for v5e).
    block_bytes, vmem_limit, multi_tc, native_lowp = 4 << 20, 32 << 20, False, False
    if "v7" in kind or "7x" in kind:
        # v7x: 2 TCs/chip, 64 MiB VMEM per TC -> bigger blocks but capped scoped VMEM.
        block_bytes, vmem_limit, multi_tc, native_lowp = 8 << 20, 40 << 20, True, True
    elif "v6" in kind:
        # v6e: single TC, 128 MiB VMEM, native bf16 VPU.
        block_bytes, vmem_limit, multi_tc, native_lowp = 8 << 20, 48 << 20, False, True
    elif "v5p" in kind or "v4" in kind:
        # megacore chips: two cores share the grid.
        block_bytes, vmem_limit, multi_tc, native_lowp = 8 << 20, 48 << 20, True, False
    # v5e / unknown: keep the conservative defaults.

    # Clamp against the actual VMEM capacity if we can query it.
    try:
        vmem_cap = int(pltpu.get_tpu_info().vmem_capacity_bytes)
        vmem_limit = min(vmem_limit, (vmem_cap * 3) // 4)
        block_bytes = min(block_bytes, max(vmem_limit // 5, 1 << 20))
    except Exception:
        pass
    return block_bytes, vmem_limit, multi_tc, native_lowp


def _run_pallas_2d(x2d, *, block_bytes, vmem_limit, multi_tc, compute_dtype,
                   donate_input):
    """Run the elementwise kernel over a lane-dense (rows, 128) slab."""
    rows = x2d.shape[0]
    dtype = x2d.dtype
    itemsize = jnp.dtype(dtype).itemsize
    sub = _sublane_pack(dtype)

    # Block rows: target block_bytes, sublane-aligned; the array does NOT need
    # to divide evenly -- Pallas masks the ragged last block.
    tr = max(sub, block_bytes // (_LANE * itemsize))
    tr = _round_up(min(tr, rows), sub)
    grid_n = -(-rows // tr)

    if multi_tc:
        # Two TensorCores share the ("parallel",) grid axis: make sure both get
        # work, and keep the block counts balanced when the grid is small.
        if grid_n == 1 and rows >= 2 * sub:
            tr = _round_up(-(-rows // 2), sub)
            grid_n = -(-rows // tr)
        elif 1 < grid_n <= 8 and grid_n % 2 == 1:
            tr = _round_up(-(-rows // (grid_n + 1)), sub)
            grid_n = -(-rows // tr)

    n = rows * _LANE
    cost = pl.CostEstimate(
        flops=4 * n, transcendentals=0, bytes_accessed=2 * n * itemsize
    )

    return pl.pallas_call(
        functools.partial(_h_sigmoid_kernel, compute_dtype=compute_dtype),
        out_shape=jax.ShapeDtypeStruct((rows, _LANE), dtype),
        grid=(grid_n,),
        in_specs=[pl.BlockSpec((tr, _LANE), lambda i: (i, 0))],
        out_specs=pl.BlockSpec((tr, _LANE), lambda i: (i, 0)),
        compiler_params=pltpu.CompilerParams(
            dimension_semantics=("parallel",),
            vmem_limit_bytes=vmem_limit,
        ),
        cost_estimate=cost,
        input_output_aliases=({0: 0} if donate_input else {}),
    )(x2d)


def h_sigmoid(
    x: jax.Array,
    *,
    block_bytes: int | None = None,     # None -> per-chip auto-tuned
    donate_input: bool = False,          # alias the (aligned) input buffer
    min_pallas_elems: int = 64 * 1024,   # below this, plain XLA is faster
) -> jax.Array:
    """Elementwise hard-sigmoid relu6(x + 3)/6. Float dtypes only (matches torch)."""
    orig_shape = x.shape
    dtype = x.dtype
    n = x.size

    if not jnp.issubdtype(dtype, jnp.floating):
        raise TypeError(f"h_sigmoid expects floating-point input, got {dtype}")
    if n == 0:
        return x

    bb, vmem_limit, multi_tc, native_lowp = _chip_tuning()
    if block_bytes is not None:
        bb = block_bytes
        vmem_limit = max(vmem_limit, 4 * bb + (8 << 20))  # in+out, double-buffered

    # Compute dtype: native on chips with a low-precision VPU (v6e/v7x), f32 elsewhere.
    if jnp.dtype(dtype).itemsize >= 4 or native_lowp:
        compute_dtype = dtype
    else:
        compute_dtype = jnp.float32

    # Small-tensor fast path: pallas_call launch + plumbing dwarfs the work.
    if n < max(min_pallas_elems, _LANE):
        return _h_sigmoid_math(x, jnp.float32, dtype)

    flat = x.reshape(-1)                 # free view for contiguous inputs
    n_bulk = (n // _LANE) * _LANE
    rows = n_bulk // _LANE

    run = functools.partial(
        _run_pallas_2d,
        block_bytes=bb,
        vmem_limit=vmem_limit,
        multi_tc=multi_tc,
        compute_dtype=compute_dtype,
        donate_input=donate_input,
    )

    if n_bulk == n:
        # Fully lane-aligned: zero extra copies.
        out2d = run(flat.reshape(rows, _LANE))
        return out2d.reshape(orig_shape)

    # Ragged tail (< 128 elements): Pallas on the 128-aligned prefix, plain XLA
    # on the tiny tail.  No padded full-tensor concatenate / slice round-trips.
    out_bulk = run(flat[:n_bulk].reshape(rows, _LANE)).reshape(-1)
    out_tail = _h_sigmoid_math(flat[n_bulk:], compute_dtype, dtype)
    return jnp.concatenate([out_bulk, out_tail]).reshape(orig_shape)


def h_sigmoid_ref(x):
    y = jnp.clip(x.astype(jnp.float32) + 3.0, 0.0, 6.0) * (1.0 / 6.0)
    return y.astype(x.dtype)


if __name__ == "__main__":
    key = jax.random.PRNGKey(0)
    k1, k2, k3 = jax.random.split(key, 3)

    # 1) NCHW shape like the PyTorch module sees (force the Pallas path so the
    #    kernel itself is exercised on this small test shape).
    x1 = jax.random.normal(k1, (2, 4, 16, 16), dtype=jnp.float32) * 4.0
    y1 = jax.block_until_ready(h_sigmoid(x1, min_pallas_elems=0))
    assert y1.shape == x1.shape and y1.dtype == x1.dtype
    assert jnp.allclose(y1, h_sigmoid_ref(x1), atol=1e-6, rtol=1e-6)

    # 2) Shape whose flat size is not a multiple of 128 -> exercises the
    #    bulk-prefix Pallas path + tiny XLA tail (no padded copies).
    x2 = jax.random.normal(k2, (2, 8, 30, 30), dtype=jnp.float32) * 4.0
    y2 = jax.block_until_ready(h_sigmoid(x2, min_pallas_elems=0))
    assert y2.shape == x2.shape and y2.dtype == x2.dtype
    assert jnp.allclose(y2, h_sigmoid_ref(x2), atol=1e-6, rtol=1e-6)

    # 3) bf16 input (sublane packing = 16) through the default Pallas path;
    #    computes in native bf16 on v6e/v7x, f32 elsewhere.
    x3 = (jax.random.normal(k3, (4, 64, 32, 32), dtype=jnp.float32) * 4.0).astype(
        jnp.bfloat16
    )
    y3 = jax.block_until_ready(h_sigmoid(x3))
    assert y3.shape == x3.shape and y3.dtype == x3.dtype
    assert jnp.allclose(
        y3.astype(jnp.float32), h_sigmoid_ref(x3).astype(jnp.float32), atol=1e-2
    )

    print("KERNEL_OK")
</pallas_src>

<mosaic_0001>
module attributes {stable_mosaic.version = 11 : i64} {
  func.func @_h_sigmoid_kernel(%arg0: i32, %arg1: memref<16x128xf32, #tpu.memory_space<vmem>>, %arg2: memref<16x128xf32, #tpu.memory_space<vmem>>) attributes {dimension_semantics = [#tpu.dimension_semantics<parallel>], iteration_bounds = array<i64: 1>, scalar_prefetch = 0 : i64, scratch_operands = 0 : i64, tpu.core_type = #tpu.core_type<tc>, window_params = [{transform_indices = @transform_0, window_bounds = array<i64: 16, 128>}, {transform_indices = @transform_1, window_bounds = array<i64: 16, 128>}]} {
    %c0 = arith.constant 0 : index
    %c0_0 = arith.constant 0 : index
    %0 = vector.load %arg1[%c0, %c0_0] : memref<16x128xf32, #tpu.memory_space<vmem>>, vector<16x128xf32>
    %cst = arith.constant 3.000000e+00 : f32
    %1 = vector.broadcast %cst : f32 to vector<16x128xf32>
    %2 = arith.addf %0, %1 : vector<16x128xf32>
    %cst_1 = arith.constant 0.000000e+00 : f32
    %cst_2 = arith.constant 6.000000e+00 : f32
    %3 = vector.broadcast %cst_1 : f32 to vector<16x128xf32>
    %4 = arith.maximumf %3, %2 : vector<16x128xf32>
    %5 = vector.broadcast %cst_2 : f32 to vector<16x128xf32>
    %6 = arith.minimumf %5, %4 : vector<16x128xf32>
    %cst_3 = arith.constant 0.166666672 : f32
    %7 = vector.broadcast %cst_3 : f32 to vector<16x128xf32>
    %8 = arith.mulf %6, %7 : vector<16x128xf32>
    %c0_4 = arith.constant 0 : index
    %c0_5 = arith.constant 0 : index
    %9 = vector.load %arg2[%c0_4, %c0_5] : memref<16x128xf32, #tpu.memory_space<vmem>>, vector<16x128xf32>
    tpu.vector_store %arg2[%c0_4, %c0_5], %8 {strides = array<i32>} : memref<16x128xf32, #tpu.memory_space<vmem>>, vector<16x128xf32>,
    return
  }
  func.func @transform_0(%arg0: i32) -> (i32, i32) {
    %c0_i32 = arith.constant 0 : i32
    %c0_i32_0 = arith.constant 0 : i32
    return %arg0, %c0_i32 : i32, i32
  }
  func.func @transform_1(%arg0: i32) -> (i32, i32) {
    %c0_i32 = arith.constant 0 : i32
    %c0_i32_0 = arith.constant 0 : i32
    return %arg0, %c0_i32 : i32, i32
  }
}

</mosaic_0001>

<bundles_post_ra>
// kernel: tpu_custom_call.1
= control target key start
LH: loop header
LB: loop body
LE: loop exit
PB: predicated region body
PF: predicated region fallthrough
CT: control target
= control target key end

     0   :  { %6 = vsyncpa [#allocation3], 0  ;;  %s148_s0 = inlined_call_operand.hbm [shape: f32[16,128], index: 0, kind: input, shape index: {}]   ;;  %s149_s1 = inlined_call_operand.hbm [shape: f32[16,128], index: 1, kind: output, shape index: {}]  }
   0x1   :  { %7 = vsyncpa [#allocation4], 0  ;;  %s104_s6 = smov [#allocation2]   ;;  %s56_s10 = scalar_lea.hbm %s148_s0, 256 }
   0x2   :  { %s13_s7 = sshll.u32 %s104_s6, 4  ;;  %p57_p0 = scmp.ne.s32.totalorder %s148_s0, %s56_s10  ;;  %s14_s7 = int_to_ptr.vmem [resolvable:$true] %s13_s7 }
   0x3   :  { %p60_p1 = scmp.lt.u32.totalorder %s56_s10, %s148_s0 }
   0x5   :  { %p62_p2 = pnand %p60_p1, %p57_p0 }
   0x7   :  { %65 = shalt.err (!%p62_p2)
}
   0x8   :  { %s66_s15 = scalar_lea.vmem %s14_s7, 256  ;;  %p71_p4 = scmp.lt.s32.totalorder %s14_s7, %s14_s7 }
   0x9   :  { %p67_p3 = scmp.ne.s32.totalorder %s14_s7, %s66_s15  ;;  %p72_p5 = scmp.lt.s32.totalorder %s66_s15, %s66_s15 }
   0xb   :  { %p73_p6 = por %p72_p5, %p71_p4 }
   0xd   :  { %p74_p7 = pnand %p73_p6, %p67_p3 }
   0xf   :  { %77 = shalt.err (!%p74_p7)
}
  0x10   :  { %s105_s16 = smov 128   ;;  %s106_s17 = smov 8  }
  0x11   :  { %19 = dma.hbm_to_vmem [thread:$0]  %s148_s0, 256, %s14_s7, [#allocation3], %s105_s16, %s105_s16, %s106_s17  }
  0x12   :  { %100 = dma.done.wait [#allocation3], 256  }
  0x13   :  { %101 = vsyncadd [#allocation3], 4294967040  ;;  %v23_v0 = vld [vmem:[#allocation2] sm:$0xff]  ;;  %v24_v1 = vld [vmem:[#allocation2 + $0x8] sm:$0xff]  ;;  %s107_s20 = smov [#allocation5]  }
  0x14   :  { %v25_v2 = vadd.f32 3.0, %v23_v0  ;;  %v26_v3 = vadd.f32 3.0, %v24_v1  ;;  %s40_s21 = sshll.u32 %s107_s20, 4  ;;  %s41_s21 = int_to_ptr.vmem [resolvable:$true] %s40_s21 }
  0x15   :  { %s78_s22 = scalar_lea.vmem %s41_s21, 256  ;;  %p83_p9 = scmp.lt.s32.totalorder %s41_s21, %s41_s21 }
  0x16   :  { %v27_v4 = vmax.f32 %v25_v2, 0.0  ;;  %v28_v5 = vmax.f32 %v26_v3, 0.0  ;;  %p79_p8 = scmp.ne.s32.totalorder %s41_s21, %s78_s22  ;;  %p84_p10 = scmp.lt.s32.totalorder %s78_s22, %s78_s22 }
  0x18   :  { %v29_v6 = vmin.f32 %v27_v4, 6.0  ;;  %v30_v7 = vmin.f32 %v28_v5, 6.0  ;;  %p85_p11 = por %p84_p10, %p83_p9 }
  0x1a   :  { %v31_v8 = vmul.f32 0.16666667, %v29_v6  ;;  %v32_v9 = vmul.f32 0.16666667, %v30_v7  ;;  %p86_p12 = pnand %p85_p11, %p79_p8 }
  0x1c   :  { %33 = vst [vmem:[#allocation5] sm:$0xff] %v31_v8  ;;  %34 = vst [vmem:[#allocation5 + $0x8] sm:$0xff] %v32_v9 }
  0x1d   :  { %89 = shalt.err (!%p86_p12)
}
  0x1e   :  { %s90_s24 = scalar_lea.hbm %s149_s1, 256 }
  0x1f   :  { %p91_p13 = scmp.ne.s32.totalorder %s149_s1, %s90_s24  ;;  %p94_p0 = scmp.lt.u32.totalorder %s90_s24, %s149_s1 }
  0x21   :  { %p96_p1 = pnand %p94_p0, %p91_p13 }
  0x23   :  { %99 = shalt.err (!%p96_p1)
}
  0x24   :  { %46 = dma.vmem_to_hbm [thread:$0]  %s41_s21, 256, %s149_s1, [#allocation4], %s105_s16, %s105_s16, %s106_s17  }
  0x25   :  { %102 = dma.done.wait [#allocation4], 256  }
  0x26   :  { %103 = vsyncadd [#allocation4], 4294967040 }
  0x27   :  { %50 = vsyncpa [#allocation3], 1 }
  0x28   :  { %51 = vsyncpa [#allocation4], 1 }

</bundles_post_ra>
